<compile_context>
chip_gen: v6e
topology: v6e:2x2x1
jax: 0.10.0
libtpu: 0.0.40
codegen_flags: <defaults>
</compile_context>

<pallas_src>
import jax
import jax.numpy as jnp
from jax.experimental import pallas as pl
from jax.experimental.pallas import tpu as pltpu

IN_F = 3
OUT_F = 4
PARAM_ROWS = 8          # rows 0..2 = W^T, row 3 = bias, rows 4..7 zero
MAX_BATCH_TILE = 2048   # rows per grid step; double-buffered tiles ~4 MiB


def _linear_kernel(x_ref, p_ref, o_ref):
    # x_ref: (TB, 3)  batch tile of the input
    # p_ref: (8, 4)   rows 0..2 = W^T, row 3 = bias
    # o_ref: (TB, 4)
    x = x_ref[...]
    p = p_ref[...]
    # Unrolled K=3 contraction on the VPU (3 vmul + adds); MXU stays idle on
    # purpose — at K=3/N=4 the kernel is HBM/overhead-bound, not compute-bound.
    acc = (x[:, 0:1] * p[0:1, :]
           + x[:, 1:2] * p[1:2, :]
           + x[:, 2:3] * p[2:3, :]
           + p[3:4, :])
    o_ref[...] = acc.astype(o_ref.dtype)


def pack_params(weight, bias):
    """Pack W (4, 3) and b (4,) into one (8, 4) tile.

    Rows 0..2 hold W^T, row 3 holds the bias, rows 4..7 are zero.
    In a real model this packing happens once at parameter-init time.
    """
    p = jnp.zeros((PARAM_ROWS, OUT_F), weight.dtype)
    p = p.at[:IN_F, :].set(weight.T)
    p = p.at[IN_F, :].set(bias)
    return p


def _round_up(n, m):
    return ((n + m - 1) // m) * m


@jax.jit
def testnet_forward(x, packed_params):
    """x: (B, 3) f32, packed_params: (8, 4) f32 -> (B, 4) f32."""
    B = x.shape[0]
    # Batch tile: multiple of 8 rows, split into >=2 tiles when B allows so
    # both v7x TensorCores get work, capped at MAX_BATCH_TILE so the
    # double-buffered in/out tiles stay far under scoped VMEM on every gen.
    tb = min(MAX_BATCH_TILE, max(8, _round_up((B + 1) // 2, 8)))
    num_tiles = (B + tb - 1) // tb  # ragged last block handled by Pallas

    return pl.pallas_call(
        _linear_kernel,
        out_shape=jax.ShapeDtypeStruct((B, OUT_F), x.dtype),
        grid=(num_tiles,),
        in_specs=[
            pl.BlockSpec((tb, IN_F), lambda i: (i, 0)),
            # Grid-invariant parameter tile (constant index_map -> fetched
            # once and kept resident; pl.Buffered(1) would also document
            # this, omitted as a near-zero-win knob).
            pl.BlockSpec((PARAM_ROWS, OUT_F), lambda i: (0, 0)),
        ],
        out_specs=pl.BlockSpec((tb, OUT_F), lambda i: (i, 0)),
        compiler_params=pltpu.CompilerParams(
            dimension_semantics=("parallel",)),
    )(x, packed_params)


if __name__ == "__main__":
    key = jax.random.PRNGKey(0)
    kx, kw, kb, kx2 = jax.random.split(key, 4)

    # Deterministic init (matches nn.Linear's uniform(-1/sqrt(IN), 1/sqrt(IN))).
    bound = 1.0 / jnp.sqrt(jnp.float32(IN_F))
    weight = jax.random.uniform(kw, (OUT_F, IN_F), jnp.float32, -bound, bound)
    bias = jax.random.uniform(kb, (OUT_F,), jnp.float32, -bound, bound)
    packed = pack_params(weight, bias)

    # Small single-tile case.
    B = 8
    x = jax.random.normal(kx, (B, IN_F), jnp.float32)
    y = jax.block_until_ready(testnet_forward(x, packed))
    y_ref = x @ weight.T + bias
    assert y.shape == (B, OUT_F)
    assert jnp.allclose(y, y_ref, atol=1e-5, rtol=1e-5)

    # Multi-tile case with a ragged last block: B=520 -> tb=264, 2 grid tiles,
    # second tile only partially valid (covers the no-padding path).
    B2 = 520
    x2 = jax.random.normal(kx2, (B2, IN_F), jnp.float32)
    y2 = jax.block_until_ready(testnet_forward(x2, packed))
    y2_ref = x2 @ weight.T + bias
    assert y2.shape == (B2, OUT_F)
    assert jnp.allclose(y2, y2_ref, atol=1e-5, rtol=1e-5)

    print("KERNEL_OK")
</pallas_src>

<mosaic_0001>
module attributes {stable_mosaic.version = 11 : i64} {
  func.func @_linear_kernel(%arg0: i32, %arg1: memref<8x3xf32, #tpu.memory_space<vmem>>, %arg2: memref<8x4xf32, #tpu.memory_space<vmem>>, %arg3: memref<8x4xf32, #tpu.memory_space<vmem>>) attributes {dimension_semantics = [#tpu.dimension_semantics<parallel>], iteration_bounds = array<i64: 1>, scalar_prefetch = 0 : i64, scratch_operands = 0 : i64, tpu.core_type = #tpu.core_type<tc>, window_params = [{transform_indices = @transform_0, window_bounds = array<i64: 8, 3>}, {pipeline_mode = #tpu.pipeline_mode<synchronous>, transform_indices = @transform_1, window_bounds = array<i64: 8, 4>}, {transform_indices = @transform_2, window_bounds = array<i64: 8, 4>}]} {
    %c0 = arith.constant 0 : index
    %c0_0 = arith.constant 0 : index
    %0 = vector.load %arg1[%c0, %c0_0] : memref<8x3xf32, #tpu.memory_space<vmem>>, vector<8x3xf32>
    %c0_1 = arith.constant 0 : index
    %c0_2 = arith.constant 0 : index
    %1 = vector.load %arg2[%c0_1, %c0_2] : memref<8x4xf32, #tpu.memory_space<vmem>>, vector<8x4xf32>
    %2 = vector.extract_strided_slice %0 {offsets = [0, 0], sizes = [8, 1], strides = [1, 1]} : vector<8x3xf32> to vector<8x1xf32>
    %3 = vector.extract_strided_slice %1 {offsets = [0, 0], sizes = [1, 4], strides = [1, 1]} : vector<8x4xf32> to vector<1x4xf32>
    %4 = vector.broadcast %2 : vector<8x1xf32> to vector<8x4xf32>
    %5 = vector.broadcast %3 : vector<1x4xf32> to vector<8x4xf32>
    %6 = arith.mulf %4, %5 : vector<8x4xf32>
    %7 = vector.extract_strided_slice %0 {offsets = [0, 1], sizes = [8, 1], strides = [1, 1]} : vector<8x3xf32> to vector<8x1xf32>
    %8 = vector.extract_strided_slice %1 {offsets = [1, 0], sizes = [1, 4], strides = [1, 1]} : vector<8x4xf32> to vector<1x4xf32>
    %9 = vector.broadcast %7 : vector<8x1xf32> to vector<8x4xf32>
    %10 = vector.broadcast %8 : vector<1x4xf32> to vector<8x4xf32>
    %11 = arith.mulf %9, %10 : vector<8x4xf32>
    %12 = arith.addf %6, %11 : vector<8x4xf32>
    %13 = vector.extract_strided_slice %0 {offsets = [0, 2], sizes = [8, 1], strides = [1, 1]} : vector<8x3xf32> to vector<8x1xf32>
    %14 = vector.extract_strided_slice %1 {offsets = [2, 0], sizes = [1, 4], strides = [1, 1]} : vector<8x4xf32> to vector<1x4xf32>
    %15 = vector.broadcast %13 : vector<8x1xf32> to vector<8x4xf32>
    %16 = vector.broadcast %14 : vector<1x4xf32> to vector<8x4xf32>
    %17 = arith.mulf %15, %16 : vector<8x4xf32>
    %18 = arith.addf %12, %17 : vector<8x4xf32>
    %19 = vector.extract_strided_slice %1 {offsets = [3, 0], sizes = [1, 4], strides = [1, 1]} : vector<8x4xf32> to vector<1x4xf32>
    %20 = vector.broadcast %19 : vector<1x4xf32> to vector<8x4xf32>
    %21 = arith.addf %18, %20 : vector<8x4xf32>
    %c0_3 = arith.constant 0 : index
    %c0_4 = arith.constant 0 : index
    %22 = vector.load %arg3[%c0_3, %c0_4] : memref<8x4xf32, #tpu.memory_space<vmem>>, vector<8x4xf32>
    tpu.vector_store %arg3[%c0_3, %c0_4], %21 {strides = array<i32>} : memref<8x4xf32, #tpu.memory_space<vmem>>, vector<8x4xf32>,
    return
  }
  func.func @transform_0(%arg0: i32) -> (i32, i32) {
    %c0_i32 = arith.constant 0 : i32
    %c0_i32_0 = arith.constant 0 : i32
    return %arg0, %c0_i32 : i32, i32
  }
  func.func @transform_1(%arg0: i32) -> (i32, i32) {
    %c0_i32 = arith.constant 0 : i32
    %c0_i32_0 = arith.constant 0 : i32
    %c0_i32_1 = arith.constant 0 : i32
    return %c0_i32, %c0_i32_0 : i32, i32
  }
  func.func @transform_2(%arg0: i32) -> (i32, i32) {
    %c0_i32 = arith.constant 0 : i32
    %c0_i32_0 = arith.constant 0 : i32
    return %arg0, %c0_i32 : i32, i32
  }
}

</mosaic_0001>

<bundles_post_ra>
// kernel: testnet_forward.1
= control target key start
LH: loop header
LB: loop body
LE: loop exit
PB: predicated region body
PF: predicated region fallthrough
CT: control target
= control target key end

     0   :  { %v61_v0 = vmov 0   ;;  %v62_v2 = vmov 2   ;;  %v63_v3 = vmov 1   ;;  %v18_v4 = vlaneseq  ;;  %s88_s0 = inlined_call_operand.vmem [shape: f32[8,3], index: 0, kind: input, shape index: {}]   ;;  %s89_s1 = inlined_call_operand.vmem [shape: f32[8,4], index: 1, kind: input, shape index: {}]   ;;  %s90_s2 = inlined_call_operand.vmem [shape: f32[8,4], index: 2, kind: output, shape index: {}]  }
   0x1   :  { %57 = vset.pattern.permute.xlu0 %v61_v0  ;;  %v11_v1 = vld [vmem:[%s88_s0] sm:$0xff]  ;;  %59 = vset.pattern.permute.xlu1 %v62_v2  ;;  %vm48_vm0 = vcmask 31744  }
   0x2   :  { %15 = vperm.xlu0 %57, %v11_v1   ;;  %34 = vperm.xlu1 %59, %v11_v1   ;;  %v19_v5 = vshrl.u32 %v18_v4, 7  ;;  %v12_v9 = vld [vmem:[%s89_s1] sm:$0xff] }
   0x4   :  { %v20_v6 = vsub.s32 0, %v19_v5  ;;  %v29_v7 = vsub.s32 1, %v19_v5  ;;  %v39_v8 = vsub.s32 2, %v19_v5  ;;  %v45_v15 = vsub.s32 3, %v19_v5 }
   0x6   :  { %58 = vset.pattern.permute.xlu0 %v63_v3  ;;  %v21_v11 = vrot.slane %v12_v9, %v20_v6  ;;  %v30_v12 = vrot.slane %v12_v9, %v29_v7  ;;  %v40_v13 = vrot.slane %v12_v9, %v39_v8  ;;  %v46_v21 = vrot.slane %v12_v9, %v45_v15 }
   0x7   :  { %24 = vperm.xlu0 %58, %v11_v1  }
   0xb   :  { %60 = vset.pattern.permute.xlu0 %v62_v2 }
  0x7d   :  { %v16_v10 = vpop.permute.xlu0 %15  ;;  %v35_v14 = vpop.permute.xlu1 %34 }
  0x7e   :  { %v22_v17 = vmul.f32 %v21_v11, %v16_v10  ;;  %v41_v19 = vmul.f32 %v40_v13, %v35_v14 }
  0x82   :  { %v25_v16 = vpop.permute.xlu0 %24 }
  0x83   :  { %v31_v18 = vmul.f32 %v30_v12, %v25_v16 }
  0x85   :  { %v32_v20 = vadd.f32 %v31_v18, %v22_v17 }
  0x87   :  { %v42_v22 = vadd.f32 %v41_v19, %v32_v20 }
  0x89   :  { %v47_v23 = vadd.f32 %v46_v21, %v42_v22 }
  0x8b   :  { %49 = vst.msk [vmem:[%s90_s2] sm:$0xff] %vm48_vm0, %v47_v23 }

</bundles_post_ra>
